<compile_context>
chip_gen: v7x
topology: tpu7x:2x2x1
jax: 0.10.0
libtpu: 0.0.40
codegen_flags: <defaults>
</compile_context>

<pallas_src>
import jax
import jax.numpy as jnp
from jax import lax
from jax.experimental import pallas as pl
from jax.experimental.pallas import tpu as pltpu

_MIB = 1024 * 1024


def _vmem_limit(bytes_needed, margin=4 * _MIB):
    # explicit scoped-VMEM budget: actual working set + margin, clamped to a
    # range legal on v5e/v6e (128 MiB physical) and v7x (64 MiB physical).
    return int(min(max(bytes_needed + margin, 32 * _MIB), 48 * _MIB))


# ----------------------------------------------------------------------------
# Kernels
# ----------------------------------------------------------------------------
def _gab_kernel(xr_ref, xt_ref, w1r_ref, w1t_ref, w2r_ref, w2t_ref,
                or_ref, ot_ref):
    """GlobalAttentionBlock, concat-free, lane-dense (B, C, H*W) layout.

    xr/xt:   (1, C, HW) rgb / t halves of the union
    w1r/w1t: (C, Cr)  first 1x1-conv weight, pre-transposed and split per half
    w2r/w2t: (C, Cr)  second 1x1-conv weight, split per half
    """
    xr = xr_ref[0].astype(jnp.float32)                        # (C, HW)
    xt = xt_ref[0].astype(jnp.float32)
    inv_hw = 1.0 / xr.shape[1]
    avg_r = jnp.sum(xr, axis=1, keepdims=True) * inv_hw       # (C, 1)
    avg_t = jnp.sum(xt, axis=1, keepdims=True) * inv_hw
    # squeeze-excite MLP on VPU/XLU (broadcast-multiply + reduce); avoids tiny
    # N=1 MXU dots whose push/pop latency is not hidden with grid=(B,).
    h = jnp.maximum(
        jnp.sum(w1r_ref[...] * avg_r, axis=0, keepdims=True)
        + jnp.sum(w1t_ref[...] * avg_t, axis=0, keepdims=True), 0.0)      # (1,Cr)
    gate_r = jax.nn.sigmoid(jnp.sum(w2r_ref[...] * h, axis=1, keepdims=True))
    gate_t = jax.nn.sigmoid(jnp.sum(w2t_ref[...] * h, axis=1, keepdims=True))
    or_ref[0] = (xr * gate_r).astype(or_ref.dtype)
    ot_ref[0] = (xt * gate_t).astype(ot_ref.dtype)


def _make_cbam_kernel(H, W):
    """Fully fused CBAM: ChannelGate on the (rgb|t) union + both SpatialGates.

    Activations are lane-dense (1, C, HW); only the tiny pooled maps live in a
    2D padded scratch for the 7x7 conv.
    """
    def kernel(xr_ref, xt_ref, w1r_ref, w1t_ref, w2r_ref, w2t_ref,
               sgw_ref, sgbn_ref, or_ref, ot_ref, pad_ref, sflat_ref):
        xr = xr_ref[0].astype(jnp.float32)                    # (C, HW)
        xt = xt_ref[0].astype(jnp.float32)
        C = xr.shape[0]
        HW = xr.shape[1]
        inv_hw = 1.0 / HW
        inv_c = 1.0 / C

        # -------- ChannelGate (avg & max spatial pools, shared 2-layer MLP) --
        avg_r = jnp.sum(xr, axis=1, keepdims=True) * inv_hw   # (C, 1)
        max_r = jnp.max(xr, axis=1, keepdims=True)
        avg_t = jnp.sum(xt, axis=1, keepdims=True) * inv_hw
        max_t = jnp.max(xt, axis=1, keepdims=True)
        w1r = w1r_ref[...]
        w1t = w1t_ref[...]
        w2r = w2r_ref[...]
        w2t = w2t_ref[...]

        def hidden(pr, pt):                                   # relu(W1 @ pooled)
            return jnp.maximum(
                jnp.sum(w1r * pr, axis=0, keepdims=True)
                + jnp.sum(w1t * pt, axis=0, keepdims=True), 0.0)          # (1,Cr)

        h = hidden(avg_r, avg_t) + hidden(max_r, max_t)
        gate_r = jax.nn.sigmoid(jnp.sum(w2r * h, axis=1, keepdims=True))  # (C,1)
        gate_t = jax.nn.sigmoid(jnp.sum(w2t * h, axis=1, keepdims=True))

        xr_g = xr * gate_r                                    # lane-dense gating
        xt_g = xt * gate_t

        # -------- channel pooling (sublane reduce) while gated acts are live
        mx_r = jnp.max(xr_g, axis=0, keepdims=True)           # (1, HW)
        mn_r = jnp.sum(xr_g, axis=0, keepdims=True) * inv_c
        mx_t = jnp.max(xt_g, axis=0, keepdims=True)
        mn_t = jnp.sum(xt_g, axis=0, keepdims=True) * inv_c

        # stage channel-gated activations in the output VMEM blocks so their
        # live range ends here (no multi-MB values held across the conv)
        or_ref[0] = xr_g.astype(or_ref.dtype)
        ot_ref[0] = xt_g.astype(ot_ref.dtype)

        # -------- scatter flat pooled rows into zero-padded 2D planes --------
        pad_ref[...] = jnp.zeros(pad_ref.shape, jnp.float32)
        pooled = (mx_r, mn_r, mx_t, mn_t)
        for p in range(4):
            row = pooled[p]
            for hh in range(H):
                pad_ref[p, pl.ds(3 + hh, 1), pl.ds(3, W)] = (
                    row[:, hh * W:(hh + 1) * W])

        # -------- 7x7 conv per half: 4 independent accumulator chains --------
        def conv7x7(half):
            accs = [jnp.zeros((H, W), jnp.float32) for _ in range(4)]
            for c in range(2):
                # hoisted SMEM scalar weight reads for this (half, channel)
                wts = [sgw_ref[half * 98 + c * 49 + k] for k in range(49)]
                for kw in range(7):
                    # one lane-offset slab per (channel, kw): 14 instead of 98
                    slab = pad_ref[2 * half + c, :, pl.ds(kw, W)]      # (H+6, W)
                    for kh in range(7):
                        a = 2 * c + (kh & 1)
                        accs[a] = accs[a] + wts[kh * 7 + kw] * slab[kh:kh + H, :]
            return (accs[0] + accs[1]) + (accs[2] + accs[3])

        # -------- bring the spatial gate back to the flat (lane) layout ------
        for half in range(2):
            conv = conv7x7(half)                              # (H, W)
            for hh in range(H):
                sflat_ref[pl.ds(half, 1), pl.ds(hh * W, W)] = conv[hh:hh + 1, :]

        s_r = jax.nn.sigmoid(sflat_ref[0:1, :] * sgbn_ref[0] + sgbn_ref[1])
        s_t = jax.nn.sigmoid(sflat_ref[1:2, :] * sgbn_ref[2] + sgbn_ref[3])
        or_ref[0] = (or_ref[0].astype(jnp.float32) * s_r).astype(or_ref.dtype)
        ot_ref[0] = (ot_ref[0].astype(jnp.float32) * s_t).astype(ot_ref.dtype)

    return kernel


def _fusion_kernel(f1_ref, f2_ref, w1_ref, w2_ref, b_ref, o_ref):
    """Fusion: BN(Conv1x1(concat(f1,f2)) + bias), concat-free and BN-folded.

    f1/f2: (1, C, T) lane tile,  w1/w2: (Cout, C) BN-scaled weights,
    b: (Cout, 1) folded bias+shift,  o: (1, Cout, T)
    """
    y = jnp.dot(w1_ref[...], f1_ref[0].astype(jnp.float32),
                preferred_element_type=jnp.float32)
    y = y + jnp.dot(w2_ref[...], f2_ref[0].astype(jnp.float32),
                    preferred_element_type=jnp.float32)
    o_ref[0] = (y + b_ref[...]).astype(o_ref.dtype)


# ----------------------------------------------------------------------------
# Wrappers (host-side glue: weight splitting/folding, pallas_call plumbing)
# ----------------------------------------------------------------------------
def global_attention_block(rgb, t, w1, w2):
    B, C, H, W = rgb.shape
    HW = H * W
    Cr = w1.shape[0]
    rgb_f = rgb.reshape(B, C, HW)                             # free reshape
    t_f = t.reshape(B, C, HW)
    w1t_r = jnp.transpose(w1[:, :C]).astype(jnp.float32)      # (C, Cr)
    w1t_t = jnp.transpose(w1[:, C:]).astype(jnp.float32)
    w2_r = w2[:C].astype(jnp.float32)                         # (C, Cr)
    w2_t = w2[C:].astype(jnp.float32)
    bspec = pl.BlockSpec((1, C, HW), lambda b: (b, 0, 0))
    wspec = pl.BlockSpec((C, Cr), lambda b: (0, 0))
    blk = C * HW * 4
    vmem = _vmem_limit(4 * 2 * blk + 4 * 2 * C * Cr * 4)
    out_r, out_t = pl.pallas_call(
        _gab_kernel,
        out_shape=(jax.ShapeDtypeStruct((B, C, HW), rgb.dtype),
                   jax.ShapeDtypeStruct((B, C, HW), t.dtype)),
        grid=(B,),
        in_specs=[bspec, bspec, wspec, wspec, wspec, wspec],
        out_specs=(bspec, bspec),
        compiler_params=pltpu.CompilerParams(
            dimension_semantics=("parallel",), vmem_limit_bytes=vmem),
    )(rgb_f, t_f, w1t_r, w1t_t, w2_r, w2_t)
    return out_r.reshape(B, C, H, W), out_t.reshape(B, C, H, W)


def cbam(x_rgb, x_t, params):
    B, C, H, W = x_rgb.shape
    HW = H * W
    w1, w2 = params['cg_w1'], params['cg_w2']
    Cr = w1.shape[0]
    xr_f = x_rgb.reshape(B, C, HW)
    xt_f = x_t.reshape(B, C, HW)
    w1t_r = jnp.transpose(w1[:, :C]).astype(jnp.float32)      # (C, Cr)
    w1t_t = jnp.transpose(w1[:, C:]).astype(jnp.float32)
    w2_r = w2[:C].astype(jnp.float32)
    w2_t = w2[C:].astype(jnp.float32)
    sg_w = jnp.concatenate(
        [params['sg_rgb_w'].reshape(-1),
         params['sg_t_w'].reshape(-1)]).astype(jnp.float32)               # (196,)
    sg_bn = jnp.stack(
        [params['sg_rgb_scale'], params['sg_rgb_shift'],
         params['sg_t_scale'], params['sg_t_shift']]).astype(jnp.float32)  # (4,)
    bspec = pl.BlockSpec((1, C, HW), lambda b: (b, 0, 0))
    wspec = pl.BlockSpec((C, Cr), lambda b: (0, 0))
    smem = pl.BlockSpec(memory_space=pltpu.MemorySpace.SMEM)
    blk = C * HW * 4
    scratch = 4 * (H + 6) * (W + 6) * 4 + 2 * HW * 4
    vmem = _vmem_limit(4 * 2 * blk + 4 * 2 * C * Cr * 4 + scratch)
    out_r, out_t = pl.pallas_call(
        _make_cbam_kernel(H, W),
        out_shape=(jax.ShapeDtypeStruct((B, C, HW), x_rgb.dtype),
                   jax.ShapeDtypeStruct((B, C, HW), x_t.dtype)),
        grid=(B,),
        in_specs=[bspec, bspec, wspec, wspec, wspec, wspec, smem, smem],
        out_specs=(bspec, bspec),
        scratch_shapes=[pltpu.VMEM((4, H + 6, W + 6), jnp.float32),
                        pltpu.VMEM((2, HW), jnp.float32)],
        compiler_params=pltpu.CompilerParams(
            dimension_semantics=("parallel",), vmem_limit_bytes=vmem),
    )(xr_f, xt_f, w1t_r, w1t_t, w2_r, w2_t, sg_w, sg_bn)
    # TODO(synk): for v7x B==1 inference, add a second "parallel" grid axis over
    # channel blocks for the gating pass so both TensorCores get work.
    return out_r.reshape(B, C, H, W), out_t.reshape(B, C, H, W)


def fusion(f1, f2, w, b, bn_scale, bn_shift, hw_tile=256):
    """BN(Conv1x1(concat(f1,f2)) + bias), concat-free, eval-mode BN folded.

    HW is padded on the host to a multiple of the (128-multiple) tile so every
    output tile is lane-dense and the activation DMA pipelines with the MXU
    matmul.  hw_tile=256 fills the 2x256 MXU on v6e/v7x; use 128 on v5e.
    TODO(synk): bf16 activation/weight I/O on v6e/v7x (f32 accumulation) for
    the memory-bound case; kept f32 here to hold the 2e-4 check tolerance.
    """
    B, C, H, W = f1.shape
    Cout = w.shape[0]
    HW = H * W
    HW_pad = ((HW + hw_tile - 1) // hw_tile) * hw_tile
    nt = HW_pad // hw_tile
    f1r = f1.reshape(B, C, HW)
    f2r = f2.reshape(B, C, HW)
    if HW_pad != HW:
        pad = ((0, 0), (0, 0), (0, HW_pad - HW))
        f1r = jnp.pad(f1r, pad)
        f2r = jnp.pad(f2r, pad)
    sc = bn_scale.reshape(Cout, 1).astype(jnp.float32)
    # fold eval-mode BN into the 1x1-conv weights / bias (done once, tiny)
    w1 = w[:, :C].astype(jnp.float32) * sc
    w2 = w[:, C:].astype(jnp.float32) * sc
    bb = (b.reshape(Cout, 1).astype(jnp.float32) * sc
          + bn_shift.reshape(Cout, 1).astype(jnp.float32))
    act_spec = pl.BlockSpec((1, C, hw_tile), lambda i, j: (i, 0, j))
    cost = pl.CostEstimate(
        flops=2 * B * HW_pad * Cout * 2 * C,
        transcendentals=0,
        bytes_accessed=4 * (2 * B * C * HW_pad + B * Cout * HW_pad
                            + 2 * Cout * C + Cout))
    vmem = _vmem_limit(2 * 2 * C * hw_tile * 4 + 2 * Cout * hw_tile * 4
                       + 2 * 2 * Cout * C * 4 + 2 * Cout * 4)
    out = pl.pallas_call(
        _fusion_kernel,
        out_shape=jax.ShapeDtypeStruct((B, Cout, HW_pad), f1.dtype),
        grid=(B, nt),
        in_specs=[
            act_spec,
            act_spec,
            pl.BlockSpec((Cout, C), lambda i, j: (0, 0)),
            pl.BlockSpec((Cout, C), lambda i, j: (0, 0)),
            pl.BlockSpec((Cout, 1), lambda i, j: (0, 0)),
        ],
        out_specs=pl.BlockSpec((1, Cout, hw_tile), lambda i, j: (i, 0, j)),
        compiler_params=pltpu.CompilerParams(
            dimension_semantics=("parallel", "parallel"),
            vmem_limit_bytes=vmem),
        cost_estimate=cost,
    )(f1r, f2r, w1, w2, bb)
    if HW_pad != HW:
        out = out[:, :, :HW]
    return out.reshape(B, Cout, H, W)


# ----------------------------------------------------------------------------
# ModelBuilder-style forward over the attention / fusion core
# ----------------------------------------------------------------------------
def model_forward(params, data):
    # TODO(synk): rgb_backbone / t_backbone / att_*_backbone (resnet50 stacks),
    # neck, xcorr_depthwise, CARHead and the SiamCAR loss evaluator depend on
    # external cfg & modules; synthetic stand-in features are used here.
    att_rgb_zf, att_t_zf = global_attention_block(
        data['p1_rgb_zf'], data['p1_t_zf'], params['gab_w1'], params['gab_w2'])

    # att_xf = CBAM(512) on the (rgb | t) search features (concat-free, fused)
    att_rgb_xf, att_t_xf = cbam(data['p1_rgb_xf'], data['p1_t_xf'], params)

    # Fusion stage 0 (stand-in for self.rgb_0 / self.t_0)
    rgb_fused = fusion(data['rgb_xf0'], att_t_xf, params['f_rgb_w'],
                       params['f_rgb_b'], params['f_rgb_scale'],
                       params['f_rgb_shift'])
    t_fused = fusion(data['t_xf0'], att_rgb_xf, params['f_t_w'],
                     params['f_t_b'], params['f_t_scale'],
                     params['f_t_shift'])

    return {
        'att_rgb_zf': att_rgb_zf,
        'att_t_zf': att_t_zf,
        'att_rgb_xf': att_rgb_xf,
        'att_t_xf': att_t_xf,
        'rgb_fused': rgb_fused,
        't_fused': t_fused,
    }


# ----------------------------------------------------------------------------
# Pure-JAX references (semantics check against the PyTorch definitions)
# ----------------------------------------------------------------------------
def _channel_gate_ref(x, w1, w2):
    avg = x.mean(axis=(2, 3), keepdims=True)
    mx = x.max(axis=(2, 3), keepdims=True)

    def mlp(p):
        h = jnp.maximum(jnp.einsum('rc,bcij->brij', w1, p), 0.0)
        return jnp.einsum('cr,brij->bcij', w2, h)

    return x * jax.nn.sigmoid(mlp(avg) + mlp(mx))


def _spatial_gate_ref(x, w, bn_scale, bn_shift):
    cp = jnp.stack([x.max(axis=1), x.mean(axis=1)], axis=1)     # (B,2,H,W)
    conv = lax.conv_general_dilated(
        cp, w[None], window_strides=(1, 1), padding=[(3, 3), (3, 3)],
        dimension_numbers=('NCHW', 'OIHW', 'NCHW'))             # (B,1,H,W)
    s = jax.nn.sigmoid(conv * bn_scale + bn_shift)
    return x * s


def _gab_ref(rgb, t, w1, w2):
    u = jnp.concatenate([rgb, t], axis=1)
    y = u.mean(axis=(2, 3), keepdims=True)
    h = jnp.maximum(jnp.einsum('rc,bcij->brij', w1, y), 0.0)
    s = jax.nn.sigmoid(jnp.einsum('cr,brij->bcij', w2, h))
    u = u * s
    c = rgb.shape[1]
    return u[:, :c], u[:, c:]


def _fusion_ref(f1, f2, w, b, sc, sh):
    u = jnp.concatenate([f1, f2], axis=1)
    y = jnp.einsum('oc,bchw->bohw', w, u) + b[None, :, None, None]
    return y * sc[None, :, None, None] + sh[None, :, None, None]


def _forward_ref(params, data):
    att_rgb_zf, att_t_zf = _gab_ref(data['p1_rgb_zf'], data['p1_t_zf'],
                                    params['gab_w1'], params['gab_w2'])
    union = jnp.concatenate([data['p1_rgb_xf'], data['p1_t_xf']], axis=1)
    cg = _channel_gate_ref(union, params['cg_w1'], params['cg_w2'])
    ch = union.shape[1] // 2
    att_rgb_xf = _spatial_gate_ref(cg[:, :ch], params['sg_rgb_w'],
                                   params['sg_rgb_scale'], params['sg_rgb_shift'])
    att_t_xf = _spatial_gate_ref(cg[:, ch:], params['sg_t_w'],
                                 params['sg_t_scale'], params['sg_t_shift'])
    rgb_fused = _fusion_ref(data['rgb_xf0'], att_t_xf, params['f_rgb_w'],
                            params['f_rgb_b'], params['f_rgb_scale'],
                            params['f_rgb_shift'])
    t_fused = _fusion_ref(data['t_xf0'], att_rgb_xf, params['f_t_w'],
                          params['f_t_b'], params['f_t_scale'],
                          params['f_t_shift'])
    return {
        'att_rgb_zf': att_rgb_zf, 'att_t_zf': att_t_zf,
        'att_rgb_xf': att_rgb_xf, 'att_t_xf': att_t_xf,
        'rgb_fused': rgb_fused, 't_fused': t_fused,
    }


# ----------------------------------------------------------------------------
# Deterministic parameter init
# ----------------------------------------------------------------------------
def init_params(key, c_half, reduction=16):
    c_union = 2 * c_half
    c_red = max(c_union // reduction, 1)
    keys = jax.random.split(key, 12)
    rnd = lambda k, shape, s=0.2: (s * jax.random.normal(k, shape)).astype(jnp.float32)
    eps = 1e-5
    # eval-mode BN: running_mean=0, running_var=1 -> scale = gamma/sqrt(1+eps), shift = beta
    sg_gamma_rgb, sg_beta_rgb = 0.9, 0.05
    sg_gamma_t, sg_beta_t = 1.1, -0.05
    f_gamma = jnp.linspace(0.8, 1.2, c_half).astype(jnp.float32)
    f_beta = jnp.linspace(-0.1, 0.1, c_half).astype(jnp.float32)
    return {
        # GlobalAttentionBlock(512) -> here channel = c_union
        'gab_w1': rnd(keys[0], (c_red, c_union)),
        'gab_w2': rnd(keys[1], (c_union, c_red)),
        # CBAM ChannelGate(512)
        'cg_w1': rnd(keys[2], (c_red, c_union)),
        'cg_w2': rnd(keys[3], (c_union, c_red)),
        # SpatialGate (rgb / t): 7x7 conv (2->1), BN eval-mode folded
        'sg_rgb_w': rnd(keys[4], (2, 7, 7)),
        'sg_rgb_scale': jnp.float32(sg_gamma_rgb / jnp.sqrt(1.0 + eps)),
        'sg_rgb_shift': jnp.float32(sg_beta_rgb),
        'sg_t_w': rnd(keys[5], (2, 7, 7)),
        'sg_t_scale': jnp.float32(sg_gamma_t / jnp.sqrt(1.0 + eps)),
        'sg_t_shift': jnp.float32(sg_beta_t),
        # Fusion(2*c_half, c_half): 1x1 conv + bias + BN (eval-mode folded)
        'f_rgb_w': rnd(keys[6], (c_half, c_union)),
        'f_rgb_b': rnd(keys[7], (c_half,)),
        'f_rgb_scale': (f_gamma / jnp.sqrt(1.0 + eps)).astype(jnp.float32),
        'f_rgb_shift': f_beta,
        'f_t_w': rnd(keys[8], (c_half, c_union)),
        'f_t_b': rnd(keys[9], (c_half,)),
        'f_t_scale': (f_gamma / jnp.sqrt(1.0 + eps)).astype(jnp.float32),
        'f_t_shift': f_beta,
    }


# ----------------------------------------------------------------------------
if __name__ == "__main__":
    key = jax.random.PRNGKey(0)
    B, C_HALF, H, W = 2, 16, 16, 16        # small stand-in for 512-channel features
    k_p, k_d = jax.random.split(key)
    params = init_params(k_p, C_HALF)

    dkeys = jax.random.split(k_d, 6)
    mk = lambda k: jax.random.normal(k, (B, C_HALF, H, W), dtype=jnp.float32)
    data = {
        'p1_rgb_zf': mk(dkeys[0]),
        'p1_t_zf': mk(dkeys[1]),
        'p1_rgb_xf': mk(dkeys[2]),
        'p1_t_xf': mk(dkeys[3]),
        'rgb_xf0': mk(dkeys[4]),
        't_xf0': mk(dkeys[5]),
    }

    out = jax.block_until_ready(model_forward(params, data))
    ref = jax.block_until_ready(_forward_ref(params, data))

    for name in out:
        o, r = out[name], ref[name]
        assert o.shape == r.shape, (name, o.shape, r.shape)
        assert bool(jnp.all(jnp.isfinite(o))), name
        assert bool(jnp.allclose(o, r, atol=2e-4, rtol=2e-4)), (
            name, float(jnp.max(jnp.abs(o - r))))

    print("KERNEL_OK")
</pallas_src>

<mosaic_0001>
module attributes {stable_mosaic.version = 11 : i64} {
  func.func @_gab_kernel(%arg0: i32, %arg1: memref<1x16x256xf32, #tpu.memory_space<vmem>>, %arg2: memref<1x16x256xf32, #tpu.memory_space<vmem>>, %arg3: memref<16x2xf32, #tpu.memory_space<vmem>>, %arg4: memref<16x2xf32, #tpu.memory_space<vmem>>, %arg5: memref<16x2xf32, #tpu.memory_space<vmem>>, %arg6: memref<16x2xf32, #tpu.memory_space<vmem>>, %arg7: memref<1x16x256xf32, #tpu.memory_space<vmem>>, %arg8: memref<1x16x256xf32, #tpu.memory_space<vmem>>) attributes {dimension_semantics = [#tpu.dimension_semantics<parallel>], iteration_bounds = array<i64: 2>, scalar_prefetch = 0 : i64, scratch_operands = 0 : i64, tpu.core_type = #tpu.core_type<tc>, window_params = [{transform_indices = @transform_0, window_bounds = array<i64: 1, 16, 256>}, {transform_indices = @transform_1, window_bounds = array<i64: 1, 16, 256>}, {pipeline_mode = #tpu.pipeline_mode<synchronous>, transform_indices = @transform_2, window_bounds = array<i64: 16, 2>}, {pipeline_mode = #tpu.pipeline_mode<synchronous>, transform_indices = @transform_3, window_bounds = array<i64: 16, 2>}, {pipeline_mode = #tpu.pipeline_mode<synchronous>, transform_indices = @transform_4, window_bounds = array<i64: 16, 2>}, {pipeline_mode = #tpu.pipeline_mode<synchronous>, transform_indices = @transform_5, window_bounds = array<i64: 16, 2>}, {transform_indices = @transform_6, window_bounds = array<i64: 1, 16, 256>}, {transform_indices = @transform_7, window_bounds = array<i64: 1, 16, 256>}]} {
    %c0 = arith.constant 0 : index
    %c0_0 = arith.constant 0 : index
    %c0_1 = arith.constant 0 : index
    %0 = vector.load %arg1[%c0, %c0_0, %c0_1] : memref<1x16x256xf32, #tpu.memory_space<vmem>>, vector<1x16x256xf32>
    %1 = vector.shape_cast %0 : vector<1x16x256xf32> to vector<16x256xf32>
    %c0_2 = arith.constant 0 : index
    %c0_3 = arith.constant 0 : index
    %c0_4 = arith.constant 0 : index
    %2 = vector.load %arg2[%c0_2, %c0_3, %c0_4] : memref<1x16x256xf32, #tpu.memory_space<vmem>>, vector<1x16x256xf32>
    %3 = vector.shape_cast %2 : vector<1x16x256xf32> to vector<16x256xf32>
    %cst = arith.constant dense<0.000000e+00> : vector<16xf32>
    %4 = vector.multi_reduction <add>, %1, %cst [1] : vector<16x256xf32> to vector<16xf32>
    %5 = vector.shape_cast %4 : vector<16xf32> to vector<16x1xf32>
    %cst_5 = arith.constant 3.906250e-03 : f32
    %6 = vector.broadcast %cst_5 : f32 to vector<16x1xf32>
    %7 = arith.mulf %5, %6 : vector<16x1xf32>
    %cst_6 = arith.constant dense<0.000000e+00> : vector<16xf32>
    %8 = vector.multi_reduction <add>, %3, %cst_6 [1] : vector<16x256xf32> to vector<16xf32>
    %9 = vector.shape_cast %8 : vector<16xf32> to vector<16x1xf32>
    %cst_7 = arith.constant 3.906250e-03 : f32
    %10 = vector.broadcast %cst_7 : f32 to vector<16x1xf32>
    %11 = arith.mulf %9, %10 : vector<16x1xf32>
    %c0_8 = arith.constant 0 : index
    %c0_9 = arith.constant 0 : index
    %12 = vector.load %arg3[%c0_8, %c0_9] : memref<16x2xf32, #tpu.memory_space<vmem>>, vector<16x2xf32>
    %13 = vector.broadcast %7 : vector<16x1xf32> to vector<16x2xf32>
    %14 = arith.mulf %12, %13 : vector<16x2xf32>
    %cst_10 = arith.constant dense<0.000000e+00> : vector<2xf32>
    %15 = vector.multi_reduction <add>, %14, %cst_10 [0] : vector<16x2xf32> to vector<2xf32>
    %16 = vector.shape_cast %15 : vector<2xf32> to vector<1x2xf32>
    %c0_11 = arith.constant 0 : index
    %c0_12 = arith.constant 0 : index
    %17 = vector.load %arg4[%c0_11, %c0_12] : memref<16x2xf32, #tpu.memory_space<vmem>>, vector<16x2xf32>
    %18 = vector.broadcast %11 : vector<16x1xf32> to vector<16x2xf32>
    %19 = arith.mulf %17, %18 : vector<16x2xf32>
    %cst_13 = arith.constant dense<0.000000e+00> : vector<2xf32>
    %20 = vector.multi_reduction <add>, %19, %cst_13 [0] : vector<16x2xf32> to vector<2xf32>
    %21 = vector.shape_cast %20 : vector<2xf32> to vector<1x2xf32>
    %22 = arith.addf %16, %21 : vector<1x2xf32>
    %cst_14 = arith.constant 0.000000e+00 : f32
    %23 = vector.broadcast %cst_14 : f32 to vector<1x2xf32>
    %24 = arith.maximumf %22, %23 : vector<1x2xf32>
    %c0_15 = arith.constant 0 : index
    %c0_16 = arith.constant 0 : index
    %25 = vector.load %arg5[%c0_15, %c0_16] : memref<16x2xf32, #tpu.memory_space<vmem>>, vector<16x2xf32>
    %26 = vector.broadcast %24 : vector<1x2xf32> to vector<16x2xf32>
    %27 = arith.mulf %25, %26 : vector<16x2xf32>
    %cst_17 = arith.constant dense<0.000000e+00> : vector<16xf32>
    %28 = vector.multi_reduction <add>, %27, %cst_17 [1] : vector<16x2xf32> to vector<16xf32>
    %29 = vector.shape_cast %28 : vector<16xf32> to vector<16x1xf32>
    %30 = arith.negf %29 : vector<16x1xf32>
    %31 = math.exp %30 : vector<16x1xf32>
    %cst_18 = arith.constant 1.000000e+00 : f32
    %32 = vector.broadcast %cst_18 : f32 to vector<16x1xf32>
    %33 = arith.addf %32, %31 : vector<16x1xf32>
    %34 = arith.divf %32, %33 : vector<16x1xf32>
    %c0_19 = arith.constant 0 : index
    %c0_20 = arith.constant 0 : index
    %35 = vector.load %arg6[%c0_19, %c0_20] : memref<16x2xf32, #tpu.memory_space<vmem>>, vector<16x2xf32>
    %36 = vector.broadcast %24 : vector<1x2xf32> to vector<16x2xf32>
    %37 = arith.mulf %35, %36 : vector<16x2xf32>
    %cst_21 = arith.constant dense<0.000000e+00> : vector<16xf32>
    %38 = vector.multi_reduction <add>, %37, %cst_21 [1] : vector<16x2xf32> to vector<16xf32>
    %39 = vector.shape_cast %38 : vector<16xf32> to vector<16x1xf32>
    %40 = arith.negf %39 : vector<16x1xf32>
    %41 = math.exp %40 : vector<16x1xf32>
    %cst_22 = arith.constant 1.000000e+00 : f32
    %42 = vector.broadcast %cst_22 : f32 to vector<16x1xf32>
    %43 = arith.addf %42, %41 : vector<16x1xf32>
    %44 = arith.divf %42, %43 : vector<16x1xf32>
    %45 = vector.broadcast %34 : vector<16x1xf32> to vector<16x256xf32>
    %46 = arith.mulf %1, %45 : vector<16x256xf32>
    %c0_23 = arith.constant 0 : index
    %c0_24 = arith.constant 0 : index
    %c0_25 = arith.constant 0 : index
    %47 = vector.load %arg7[%c0_23, %c0_24, %c0_25] : memref<1x16x256xf32, #tpu.memory_space<vmem>>, vector<1x16x256xf32>
    %48 = vector.shape_cast %47 : vector<1x16x256xf32> to vector<16x256xf32>
    %49 = vector.shape_cast %46 : vector<16x256xf32> to vector<1x16x256xf32>
    tpu.vector_store %arg7[%c0_23, %c0_24, %c0_25], %49 {strides = array<i32>} : memref<1x16x256xf32, #tpu.memory_space<vmem>>, vector<1x16x256xf32>,
    %50 = vector.broadcast %44 : vector<16x1xf32> to vector<16x256xf32>
    %51 = arith.mulf %3, %50 : vector<16x256xf32>
    %c0_26 = arith.constant 0 : index
    %c0_27 = arith.constant 0 : index
    %c0_28 = arith.constant 0 : index
    %52 = vector.load %arg8[%c0_26, %c0_27, %c0_28] : memref<1x16x256xf32, #tpu.memory_space<vmem>>, vector<1x16x256xf32>
    %53 = vector.shape_cast %52 : vector<1x16x256xf32> to vector<16x256xf32>
    %54 = vector.shape_cast %51 : vector<16x256xf32> to vector<1x16x256xf32>
    tpu.vector_store %arg8[%c0_26, %c0_27, %c0_28], %54 {strides = array<i32>} : memref<1x16x256xf32, #tpu.memory_space<vmem>>, vector<1x16x256xf32>,
    return
  }
  func.func @transform_0(%arg0: i32) -> (i32, i32, i32) {
    %c0_i32 = arith.constant 0 : i32
    %c0_i32_0 = arith.constant 0 : i32
    %c0_i32_1 = arith.constant 0 : i32
    return %arg0, %c0_i32, %c0_i32_0 : i32, i32, i32
  }
  func.func @transform_1(%arg0: i32) -> (i32, i32, i32) {
    %c0_i32 = arith.constant 0 : i32
    %c0_i32_0 = arith.constant 0 : i32
    %c0_i32_1 = arith.constant 0 : i32
    return %arg0, %c0_i32, %c0_i32_0 : i32, i32, i32
  }
  func.func @transform_2(%arg0: i32) -> (i32, i32) {
    %c0_i32 = arith.constant 0 : i32
    %c0_i32_0 = arith.constant 0 : i32
    %c0_i32_1 = arith.constant 0 : i32
    return %c0_i32, %c0_i32_0 : i32, i32
  }
  func.func @transform_3(%arg0: i32) -> (i32, i32) {
    %c0_i32 = arith.constant 0 : i32
    %c0_i32_0 = arith.constant 0 : i32
    %c0_i32_1 = arith.constant 0 : i32
    return %c0_i32, %c0_i32_0 : i32, i32
  }
  func.func @transform_4(%arg0: i32) -> (i32, i32) {
    %c0_i32 = arith.constant 0 : i32
    %c0_i32_0 = arith.constant 0 : i32
    %c0_i32_1 = arith.constant 0 : i32
    return %c0_i32, %c0_i32_0 : i32, i32
  }
  func.func @transform_5(%arg0: i32) -> (i32, i32) {
    %c0_i32 = arith.constant 0 : i32
    %c0_i32_0 = arith.constant 0 : i32
    %c0_i32_1 = arith.constant 0 : i32
    return %c0_i32, %c0_i32_0 : i32, i32
  }
  func.func @transform_6(%arg0: i32) -> (i32, i32, i32) {
    %c0_i32 = arith.constant 0 : i32
    %c0_i32_0 = arith.constant 0 : i32
    %c0_i32_1 = arith.constant 0 : i32
    return %arg0, %c0_i32, %c0_i32_0 : i32, i32, i32
  }
  func.func @transform_7(%arg0: i32) -> (i32, i32, i32) {
    %c0_i32 = arith.constant 0 : i32
    %c0_i32_0 = arith.constant 0 : i32
    %c0_i32_1 = arith.constant 0 : i32
    return %arg0, %c0_i32, %c0_i32_0 : i32, i32, i32
  }
}

</mosaic_0001>

<bundles_post_ra>
// kernel: tpu_custom_call.1
= control target key start
LH: loop header
LB: loop body
LE: loop exit
PB: predicated region body
PF: predicated region fallthrough
CT: control target
= control target key end

     0   :  { %13 = vsyncpa [#allocation3], 0  ;;  %s1155_s0 = inlined_call_operand.vmem [shape: f32[2,16,256], index: 0, kind: input, shape index: {}]   ;;  %s1156_s1 = inlined_call_operand.hbm [shape: f32[2,16,256], index: 1, kind: input, shape index: {}]   ;;  %s1157_s2 = inlined_call_operand.vmem [shape: f32[16,2], index: 2, kind: input, shape index: {}]   ;;  %s1158_s3 = inlined_call_operand.vmem [shape: f32[16,2], index: 3, kind: input, shape index: {}]   ;;  %s1159_s4 = inlined_call_operand.vmem [shape: f32[16,2], index: 4, kind: input, shape index: {}]   ;;  %s1160_s5 = inlined_call_operand.vmem [shape: f32[16,2], index: 5, kind: input, shape index: {}]   ;;  %s1161_s6 = inlined_call_operand.hbm [shape: f32[2,16,256], index: 6, kind: output, shape index: {0}]   ;;  %s1162_s7 = inlined_call_operand.hbm [shape: f32[2,16,256], index: 7, kind: output, shape index: {1}]  }
   0x1   :  { %15 = vsyncpa [#allocation3 + $0x1], 0 }
   0x2   :  { %16 = vsyncpa [#allocation4], 0 }
   0x3   :  { %18 = vsyncpa [#allocation4 + $0x1], 0 }
   0x4   :  { %19 = vsyncpa [#allocation7], 0 }
   0x5   :  { %21 = vsyncpa [#allocation7 + $0x1], 0  ;;  %s869_s24 = smov 0   ;;  %s871_s25 = smov 0  }
   0x6   :  { %s873_s26 = smov 0   ;;  %s875_s27 = smov 0  }
   0x7 LB: > { %s890_s28 = sadd.s32 4294967295, %s820_s27   ;;  %s593_s29 = sadd.s32 4294967294, %s820_s27   ;;  %s820_s27 = sphi %s875_s27, %s1176_s27   ;;  %s816_s26 = sphi %s873_s26, %s1175_s26   ;;  %s812_s25 = sphi %s871_s25, %s1174_s25   ;;  %s808_s24 = sphi %s869_s24, %s1173_s24  }
   0x8   : > { %s894_s30 = sadd.s32 1, %s820_s27   ;;  %s60_s8 = sadd.s32 1, %s816_s26 }
   0x9   : > { %s57_s9 = ssub.s32 %s820_s27, %s894_s30  ;;  %p67_p0 = scmp.ne.s32.totalorder %s816_s26, %s812_s25 }
   0xa   : > { %p58_p1 = scmp.eq.s32.totalorder %s57_s9, 0  ;;  %p68_p2 = scmp.eq.s32.totalorder %s820_s27, 0 }
   0xb   : > { %p73_p3 = scmp.ne.s32.totalorder %s812_s25, %s808_s24  ;;  %p74_p4 = scmp.eq.s32.totalorder %s890_s28, 0 }
   0xc   : > { %s906_s10 = scalar_select %p58_p1, %s816_s26, %s60_s8  }
   0xd   : > { %p908_p5 = por %p68_p2, %p67_p0  ;;  %p912_p6 = por %p74_p4, %p73_p3 }
   0xe   : > { %p181_p7 = scmp.eq.s32.totalorder %s890_s28, 1  ;;  %p187_p8 = scmp.eq.s32.totalorder %s593_s29, 1 }
   0xf   : > { %p638_p10 = scmp.lt.s32.totalorder %s820_s27, 2  ;;  %s253_s15 = sand.u32 1, %s816_s26  }
  0x10   : > { %p919_p11 = por %p181_p7, %p67_p0  ;;  %p923_p12 = por %p187_p8, %p73_p3 }
  0x11   : > { %s617_s16 = sshll.u32 %s820_s27, 9  ;;  %s596_s17 = sshll.u32 %s253_s15, 5 }
  0x12   : > { %s1166_s13 = scalar_select %p919_p11, 1, 0 }
  0x13   : > { %s1167_s14 = scalar_select %p923_p12, 1, 0 }
  0x14   : > { %s932_s20 = scalar_lea.hbm %s1156_s1, %s617_s16  ;;  %s257_s21 = scalar_lea.vmem [#allocation2], %s596_s17 }
  0x15   : > { %s264_s22 = sshll.u32 %s257_s21, 4  ;;  %p936_p13 = pnand %p638_p10, %p908_p5  ;;  %s940_s22 = int_to_ptr.vmem [resolvable:$true] %s264_s22 }
  0x16   : > { %s942_s29 = scalar_lea.sflag [#allocation3], %s253_s15  ;;  %s692_s8 = scalar_lea.hbm %s932_s20, 512 }
  0x17   : > { %p693_p0 = scmp.ne.s32.totalorder %s932_s20, %s692_s8  ;;  %p694_p1 = pneg %p936_p13 }
  0x18   : > { %s697_s16 = scalar_lea.hbm %s1156_s1, 1024  ;;  %p698_p4 = scmp.lt.u32.totalorder %s932_s20, %s1156_s1 }
  0x19   : > { %p695_p2 = pnand %p694_p1, %p693_p0  ;;  %p699_p5 = scmp.lt.u32.totalorder %s697_s16, %s692_s8 }
  0x1a   : > { %p701_p8 = scmp.lt.u32.totalorder %s692_s8, %s932_s20 }
  0x1b   : > { %p696_p3 = pneg %p695_p2  ;;  %p700_p7 = por %p699_p5, %p698_p4 }
  0x1d   : > { %p702_p10 = por %p701_p8, %p700_p7 }
  0x1f   : > { %p703_p9 = pnand %p702_p10, %p696_p3 }
  0x21   : > { %706 = shalt.err (!%p703_p9)
}
  0x22   : > { %s707_s15 = scalar_lea.vmem %s940_s22, 512  ;;  %s822_s19 = smov [#allocation2]  }
  0x23   : > { %p708_p0 = scmp.ne.s32.totalorder %s940_s22, %s707_s15  ;;  %s712_s21 = sshll.u32 %s822_s19, 4  ;;  %s713_s21 = int_to_ptr.vmem [resolvable:$false] %s712_s21 }
  0x24   : > { %s714_s9 = scalar_lea.vmem %s713_s21, 1024  ;;  %p715_p11 = scmp.lt.s32.totalorder %s940_s22, %s713_s21 }
  0x25   : > { %p710_p2 = pnand %p708_p0, %p694_p1  ;;  %p716_p4 = scmp.lt.s32.totalorder %s714_s9, %s707_s15 }
  0x27   : > { %p711_p12 = pneg %p710_p2  ;;  %p717_p5 = por %p716_p4, %p715_p11 }
  0x29   : > { %p718_p7 = pnand %p717_p5, %p711_p12 }
  0x2b   : > { %721 = shalt.err (!%p718_p7)
}
  0x2c   : > { %s823_s8 = smov 256   ;;  %s824_s11 = smov 16  }
  0x2d   : > { %630 = dma.hbm_to_vmem [thread:$0]  (!%p936_p13), %s932_s20, 512, %s940_s22, %s942_s29, %s823_s8, %s823_s8, %s824_s11  }
  0x2e   : > { %p599_p9 = scmp.ge.s32.totalorder %s820_s27, 1  ;;  %p272_p1 = scmp.lt.s32.totalorder %s820_s27, 3 }
  0x30   : > { %p273_p3 = pnand %p599_p9, %p272_p1 }
  0x31   : > { %s973_s16 = sand.u32 (!%p273_p3), 1, %s812_s25  }
  0x32   : > { %276 = sbr.rel (%p273_p3) target bundleno = 450 (0x1c2), region = 44  ;;  %s976_s17 = sshll.u32 (!%p273_p3), %s973_s16, 5 }
  0x33   : > { %s279_s18 = scalar_lea.sflag (!%p273_p3), [#allocation3], %s973_s16  ;;  %s282_s15 = scalar_lea.vmem (!%p273_p3), [#allocation2], %s976_s17 }
  0x39   : > { %795 = dma.done.wait (%p912_p6), %s279_s18, 512  }
  0x3a   : > { %797 = vsyncadd (%p912_p6), %s279_s18, 4294966784  ;;  %p323_p11 = scmp.lt.s32.totalorder %s890_s28, 1  ;;  %v989_v0 = vld [vmem:[%s282_s15] sm:$0xff]  ;;  %v991_v1 = vld [vmem:[%s282_s15 + $0x8] sm:$0xff]  ;;  %vm356_vm0 = vcmask 15360   ;;  %s619_s11 = sshll.u32 %s890_s28, 9 }
  0x3b   : > { %v344_v3 = vadd.f32 %v991_v1, %v989_v0  ;;  %v999_v5 = vld [vmem:[%s282_s15 + $0x10] sm:$0xff]  ;;  %v1001_v6 = vld [vmem:[%s282_s15 + $0x18] sm:$0xff]  ;;  %v366_v15 = vld [vmem:[%s1158_s3] sm:$0xff]  ;;  %s315_s18 = scalar_lea.vmem [#allocation5], %s976_s17  ;;  %s1054_s23 = scalar_lea.hbm %s1161_s6, %s619_s11 }
  0x3c   : > { %s324_s20 = scalar_select %p323_p11, %s890_s28, 1  ;;  %v347_v10 = vadd.f32 %v1001_v6, %v999_v5  ;;  %v352_v17 = vld [vmem:[%s1157_s2] sm:$0xff]  ;;  %v367_v18 = vld [vmem:[%s1158_s3 + $0x8] sm:$0xff] }
  0x3d   : > { %345 = vadd.xlane.f32.xlu1 %v344_v3  ;;  %v353_v22 = vld [vmem:[%s1157_s2 + $0x8] sm:$0xff]  ;;  %v381_v48 = vld [vmem:[%s1159_s4] sm:$0xff]  ;;  %s460_s15 = sshll.u32 %s315_s18, 4  ;;  %s1061_s29 = scalar_lea.vmem [#allocation6], %s976_s17  ;;  %s1056_s15 = int_to_ptr.vmem [resolvable:$true] %s460_s15 }
  0x3e   : > { %s618_s22 = sshll.u32 %s324_s20, 5  ;;  %v382_v47 = vld [vmem:[%s1159_s4 + $0x8] sm:$0xff]  ;;  %v403_v51 = vld [vmem:[%s1160_s5] sm:$0xff]  ;;  %s442_s12 = scalar_lea.sflag [#allocation4], %s973_s16 }
  0x3f   : > { %s327_s19 = scalar_lea.vmem %s1155_s0, %s618_s22  ;;  %v404_v50 = vld [vmem:[%s1160_s5 + $0x8] sm:$0xff]  ;;  %s722_s21 = scalar_lea.vmem %s1056_s15, 512 }
  0x40   : > { %v993_v2 = vld [vmem:[%s327_s19] sm:$0xff]  ;;  %v997_v4 = vld [vmem:[%s327_s19 + $0x8] sm:$0xff]  ;;  %v1005_v8 = vld [vmem:[%s327_s19 + $0x10] sm:$0xff]  ;;  %p723_p6 = scmp.ne.s32.totalorder %s1056_s15, %s722_s21  ;;  %p1169_p12 = scmp.ne.s32.totalorder %s1166_s13, 0 }
  0x41   : > { %v336_v7 = vadd.f32 %v997_v4, %v993_v2  ;;  %v1007_v9 = vld [vmem:[%s327_s19 + $0x18] sm:$0xff]  ;;  %348 = vadd.xlane.f32.xlu1 %v347_v10  ;;  %s825_s9 = smov [#allocation5]  }
  0x42   : > { %v339_v11 = vadd.f32 %v1007_v9, %v1005_v8  ;;  %p724_p13 = pnand %p723_p6, %p1169_p12  ;;  %s726_s17 = sshll.u32 %s825_s9, 4  ;;  %s727_s17 = int_to_ptr.vmem [resolvable:$false] %s726_s17 }
  0x43   : > { %337 = vadd.xlane.f32.xlu0 %v336_v7  ;;  %s728_s8 = scalar_lea.vmem %s727_s17, 1024  ;;  %p729_p10 = scmp.lt.s32.totalorder %s1056_s15, %s727_s17 }
  0x44   : > { %p725_p8 = pneg %p724_p13  ;;  %p730_p0 = scmp.lt.s32.totalorder %s728_s8, %s722_s21 }
  0x46   : > { %p731_p2 = por %p730_p0, %p729_p10 }
  0x47   : > { %340 = vadd.xlane.f32.xlu0 %v339_v11 }
  0x48   : > { %p732_p4 = pnand %p731_p2, %p725_p8 }
  0xca   : > { %v346_v12 = vpop.xlane.xlu1 %345 }
  0xcb   : > { %v350_v13 = vmul.f32 0.00390625, %v346_v12 }
  0xcd   : > { %v368_v20 = vmul.f32 %v366_v15, %v350_v13 }
  0xce   : > { %v349_v19 = vpop.xlane.xlu1 %348 }
  0xcf   : > { %v351_v21 = vmul.f32 0.00390625, %v349_v19  ;;  %v370_v28 = vsel %vm356_vm0, %v368_v20, 0.0 }
  0xd0   : > { %v338_v14 = vpop.xlane.xlu0 %337 }
  0xd1   : > { %v342_v16 = vmul.f32 0.00390625, %v338_v14  ;;  %v369_v26 = vmul.f32 %v367_v18, %v351_v21 }
  0xd3   : > { %v354_v24 = vmul.f32 %v352_v17, %v342_v16  ;;  %v371_v29 = vsel %vm356_vm0, %v369_v26, 0.0 }
  0xd4   : > { %v341_v23 = vpop.xlane.xlu0 %340  ;;  %v372_v31 = vadd.f32 %v371_v29, %v370_v28 }
  0xd5   : > { %v343_v25 = vmul.f32 0.00390625, %v341_v23  ;;  %v357_v30 = vsel %vm356_vm0, %v354_v24, 0.0 }
  0xd6   : > { %v373_v34 = vrot.slane %v372_v31, 4 }
  0xd7   : > { %v355_v27 = vmul.f32 %v353_v22, %v343_v25 }
  0xd8   : > { %v374_v36 = vadd.f32 %v373_v34, %v372_v31 }
  0xd9   : > { %v358_v32 = vsel %vm356_vm0, %v355_v27, 0.0 }
  0xda   : > { %v359_v33 = vadd.f32 %v358_v32, %v357_v30  ;;  %v375_v38 = vrot.slane %v374_v36, 2 }
  0xdc   : > { %v360_v35 = vrot.slane %v359_v33, 4  ;;  %v376_v40 = vadd.f32 %v375_v38, %v374_v36 }
  0xde   : > { %v361_v37 = vadd.f32 %v360_v35, %v359_v33  ;;  %v377_v42 = vrot.slane %v376_v40, 1 }
  0xe0   : > { %v362_v39 = vrot.slane %v361_v37, 2  ;;  %v378_v44 = vadd.f32 %v377_v42, %v376_v40 }
  0xe2   : > { %v363_v41 = vadd.f32 %v362_v39, %v361_v37 }
  0xe4   : > { %v364_v43 = vrot.slane %v363_v41, 1 }
  0xe6   : > { %v365_v45 = vadd.f32 %v364_v43, %v363_v41 }
  0xe8   : > { %v379_v46 = vadd.f32 %v378_v44, %v365_v45 }
  0xea   : > { %v380_v49 = vmax.f32 %v379_v46, 0.0 }
  0xec   : > { %v384_v52 = vmul.f32 %v382_v47, %v380_v49  ;;  %v383_v53 = vmul.f32 %v381_v48, %v380_v49  ;;  %v406_v56 = vmul.f32 %v404_v50, %v380_v49  ;;  %v405_v57 = vmul.f32 %v403_v51, %v380_v49 }
  0xee   : > { %v388_v54 = vsel %vm356_vm0, %v384_v52, 0.0  ;;  %v385_v55 = vsel %vm356_vm0, %v383_v53, 0.0  ;;  %v410_v58 = vsel %vm356_vm0, %v406_v56, 0.0  ;;  %v407_v59 = vsel %vm356_vm0, %v405_v57, 0.0 }
  0xef   : > { %389 = vadd.xlane.f32.xlu1 %v388_v54  ;;  %386 = vadd.xlane.f32.xlu0 %v385_v55 }
  0xf3   : > { %411 = vadd.xlane.f32.xlu1 %v410_v58  ;;  %408 = vadd.xlane.f32.xlu0 %v407_v59 }
 0x17c   : > { %v390_v60 = vpop.xlane.xlu1 %389  ;;  %v387_v61 = vpop.xlane.xlu0 %386 }
 0x17d   : > { %v606_v62 = vmul.f32 -1.442695, %v390_v60  ;;  %v605_v63 = vmul.f32 -1.442695, %v387_v61 }
 0x17f   : > { %676 = vpow2.f32 %v606_v62 }
 0x180   : > { %678 = vpow2.f32 %v605_v63  ;;  %v412_v3 = vpop.xlane.xlu1 %411  ;;  %v409_v7 = vpop.xlane.xlu0 %408 }
 0x181   : > { %v608_v10 = vmul.f32 -1.442695, %v412_v3  ;;  %v607_v11 = vmul.f32 -1.442695, %v409_v7 }
 0x183   : > { %680 = vpow2.f32 %v608_v10 }
 0x184   : > { %682 = vpow2.f32 %v607_v11 }
 0x189   : > { %v677_v12 = vpop.eup %676 }
 0x18a   : > { %v679_v13 = vpop.eup %678  ;;  %v398_v14 = vadd.f32 1.0, %v677_v12 }
 0x18b   : > { %v397_v15 = vadd.f32 1.0, %v679_v13 }
 0x18c   : > { %684 = vrcp.f32 %v398_v14 }
 0x18d   : > { %v681_v16 = vpop.eup %680  ;;  %686 = vrcp.f32 %v397_v15 }
 0x18e   : > { %v683_v17 = vpop.eup %682  ;;  %v420_v18 = vadd.f32 1.0, %v681_v16 }
 0x18f   : > { %v419_v19 = vadd.f32 1.0, %v683_v17 }
 0x190   : > { %688 = vrcp.f32 %v420_v18 }
 0x191   : > { %690 = vrcp.f32 %v419_v19 }
 0x196   : > { %v685_v20 = vpop.eup %684 }
 0x197   : > { %v687_v21 = vpop.eup %686  ;;  %v427_v22 = vmul.f32 %v685_v20, %v1005_v8  ;;  %v428_v23 = vmul.f32 %v685_v20, %v1007_v9 }
 0x198   : > { %v425_v24 = vmul.f32 %v687_v21, %v993_v2  ;;  %v426_v25 = vmul.f32 %v687_v21, %v997_v4 }
 0x199   : > { %431 = vst [vmem:[%s315_s18 + $0x10] sm:$0xff] %v427_v22  ;;  %432 = vst [vmem:[%s315_s18 + $0x18] sm:$0xff] %v428_v23 }
 0x19a   : > { %v689_v8 = vpop.eup %688  ;;  %429 = vst [vmem:[%s315_s18] sm:$0xff] %v425_v24  ;;  %430 = vst [vmem:[%s315_s18 + $0x8] sm:$0xff] %v426_v25 }
 0x19b   : > { %v691_v9 = vpop.eup %690  ;;  %v435_v26 = vmul.f32 %v689_v8, %v999_v5  ;;  %v436_v27 = vmul.f32 %v689_v8, %v1001_v6 }
 0x19c   : > { %735 = shalt.err (!%p732_p4)
}
 0x19d   : > { %s736_s18 = scalar_lea.hbm %s1054_s23, 512  ;;  %s740_s9 = scalar_lea.hbm %s1161_s6, 1024 }
 0x19e   : > { %p737_p5 = scmp.ne.s32.totalorder %s1054_s23, %s736_s18  ;;  %p741_p1 = scmp.lt.u32.totalorder %s1054_s23, %s1161_s6 }
 0x19f   : > { %p742_p3 = scmp.lt.u32.totalorder %s740_s9, %s736_s18  ;;  %p744_p6 = scmp.lt.u32.totalorder %s736_s18, %s1054_s23 }
 0x1a0   : > { %p738_p7 = pnand %p737_p5, %p1169_p12 }
 0x1a1   : > { %p743_p11 = por %p742_p3, %p741_p1 }
 0x1a2   : > { %p739_p9 = pneg %p738_p7 }
 0x1a3   : > { %p745_p13 = por %p744_p6, %p743_p11 }
 0x1a5   : > { %p746_p8 = pnand %p745_p13, %p739_p9 }
 0x1a7   : > { %749 = shalt.err (!%p746_p8)
}
 0x1a8   : > { %s826_s21 = smov 256   ;;  %s827_s19 = smov 16   ;;  %v433_v2 = vmul.f32 %v691_v9, %v989_v0  ;;  %v434_v4 = vmul.f32 %v691_v9, %v991_v1  ;;  %439 = vst [vmem:[%s1061_s29 + $0x10] sm:$0xff] %v435_v26  ;;  %440 = vst [vmem:[%s1061_s29 + $0x18] sm:$0xff] %v436_v27 }
 0x1a9   : > { %623 = dma.vmem_to_hbm [thread:$0]  (%p1169_p12), %s1056_s15, 512, %s1054_s23, %s442_s12, %s826_s21, %s826_s21, %s827_s19  }
 0x1aa   : > { %s1100_s20 = scalar_lea.hbm %s1162_s7, %s619_s11  ;;  %s1170_s22 = sshll.u32 %s1061_s29, 4  ;;  %437 = vst [vmem:[%s1061_s29] sm:$0xff] %v433_v2  ;;  %438 = vst [vmem:[%s1061_s29 + $0x8] sm:$0xff] %v434_v4  ;;  %s1104_s22 = int_to_ptr.vmem [resolvable:$true] %s1170_s22 }
 0x1ab   : > { %s447_s15 = scalar_lea.sflag [#allocation7], %s973_s16  ;;  %s750_s23 = scalar_lea.vmem %s1104_s22, 512 }
 0x1ac   : > { %p751_p10 = scmp.ne.s32.totalorder %s1104_s22, %s750_s23  ;;  %s828_s28 = smov [#allocation6]  }
 0x1ad   : > { %s754_s12 = sshll.u32 %s828_s28, 4  ;;  %s755_s12 = int_to_ptr.vmem [resolvable:$false] %s754_s12 }
 0x1ae   : > { %p752_p0 = pnand %p751_p10, %p1169_p12  ;;  %s756_s11 = scalar_lea.vmem %s755_s12, 1024 }
 0x1af   : > { %p757_p4 = scmp.lt.s32.totalorder %s1104_s22, %s755_s12  ;;  %p758_p5 = scmp.lt.s32.totalorder %s756_s11, %s750_s23 }
 0x1b0   : > { %p753_p2 = pneg %p752_p0 }
 0x1b1   : > { %p759_p7 = por %p758_p5, %p757_p4 }
 0x1b3   : > { %p760_p9 = pnand %p759_p7, %p753_p2 }
 0x1b5   : > { %763 = shalt.err (!%p760_p9)
}
 0x1b6   : > { %s764_s29 = scalar_lea.hbm %s1100_s20, 512  ;;  %s768_s8 = scalar_lea.hbm %s1162_s7, 1024 }
 0x1b7   : > { %p765_p1 = scmp.ne.s32.totalorder %s1100_s20, %s764_s29  ;;  %p769_p6 = scmp.lt.u32.totalorder %s1100_s20, %s1162_s7 }
 0x1b8   : > { %p770_p13 = scmp.lt.u32.totalorder %s768_s8, %s764_s29  ;;  %p772_p10 = scmp.lt.u32.totalorder %s764_s29, %s1100_s20 }
 0x1b9   : > { %p766_p3 = pnand %p765_p1, %p1169_p12 }
 0x1ba   : > { %p771_p8 = por %p770_p13, %p769_p6 }
 0x1bb   : > { %p767_p11 = pneg %p766_p3 }
 0x1bc   : > { %p773_p0 = por %p772_p10, %p771_p8 }
 0x1be   : > { %p774_p2 = pnand %p773_p0, %p767_p11 }
 0x1c0   : > { %777 = shalt.err (!%p774_p2)
}
 0x1c1   : > { %624 = dma.vmem_to_hbm [thread:$0]  (%p1169_p12), %s1104_s22, 512, %s1100_s20, %s447_s15, %s826_s21, %s826_s21, %s827_s19  }
 0x1c2 PF: > { %s491_s23 = sand.u32 1, %s808_s24   ;;  %p1171_p4 = scmp.ne.s32.totalorder %s1167_s14, 0 }
 0x1c3   : > { %p1172_p5 = scmp.ge.s32.totalorder %s820_s27, 2  ;;  %s492_s12 = scalar_lea.sflag [#allocation4], %s491_s23 }
 0x1c5   : > { %p632_p7 = pnand %p1172_p5, %p1171_p4 }
 0x1c7   : > { %799 = dma.done.wait (!%p632_p7), %s492_s12, 512  }
 0x1c8   : > { %801 = vsyncadd (!%p632_p7), %s492_s12, 4294966784  ;;  %s501_s13 = scalar_lea.sflag [#allocation7], %s491_s23 }
 0x1c9   : > { %803 = dma.done.wait (!%p632_p7), %s501_s13, 512  }
 0x1ca   : > { %805 = vsyncadd (!%p632_p7), %s501_s13, 4294966784  ;;  %p24_p12 = scmp.ge.s32.totalorder %s894_s30, 4   ;;  %s1173_s24 = smov %s812_s25 }
 0x1cb   : > { %s1174_s25 = smov %s816_s26  ;;  %s1175_s26 = smov %s906_s10 }
 0x1cc   : > { %s1176_s27 = smov %s894_s30  ;;  %26 = sbr.rel (!%p24_p12) target bundleno = 7 (0x7), region = 109 }
 0x1d3   :  { %506 = vsyncpa [#allocation3], 1 }
 0x1d4   :  { %508 = vsyncpa [#allocation3 + $0x1], 1 }
 0x1d5   :  { %509 = vsyncpa [#allocation4], 1 }
 0x1d6   :  { %511 = vsyncpa [#allocation4 + $0x1], 1 }
 0x1d7   :  { %512 = vsyncpa [#allocation7], 1 }
 0x1d8   :  { %514 = vsyncpa [#allocation7 + $0x1], 1 }

</bundles_post_ra>
